<compile_context>
chip_gen: v7x
topology: tpu7x:2x2x1
jax: 0.10.0
libtpu: 0.0.40
codegen_flags: <defaults>
</compile_context>

<pallas_src>
import functools

import jax
import jax.numpy as jnp
import numpy as np
from jax import lax
from jax.experimental import pallas as pl
from jax.experimental.pallas import tpu as pltpu


def _round_up(n: int, m: int) -> int:
    return ((n + m - 1) // m) * m


def _tpu_vmem_info():
    """(vmem budget with headroom, is-small-VMEM-part) — generation aware."""
    try:
        cap = int(pltpu.get_tpu_info().vmem_capacity_bytes)
        known = True
    except Exception:  # introspection unavailable -> be conservative
        cap, known = 64 << 20, False
    if cap <= (64 << 20):  # v7x-like: leave headroom for compiler scratch
        budget = max(cap - (12 << 20), 16 << 20)
    else:                  # v5e / v6e: allow large slabs to double-buffer
        budget = min(cap - (16 << 20), 112 << 20)
    return budget, (known and cap <= (64 << 20))


# --------------------------------------------------------------------------
# Fused per-batch kernel (grid = (B,))
# --------------------------------------------------------------------------
def _fused_kernel(beta_ref, x_ref, o_ref, *, hw, chunk):
    x = x_ref[...]                                        # (C, HW) f32

    # Gram: contract HW of BOTH operands -> no transpose of the slab.
    # Kept in f32: these logits feed exp(), bf16 error there is amplified.
    gram = lax.dot_general(
        x, x, dimension_numbers=(((1,), (1,)), ((), ())),
        preferred_element_type=jnp.float32)               # (C, C) f32

    # torch: softmax(rowmax - gram).  Softmax is shift invariant, so this
    # equals softmax(rowmin - gram); rowmin - gram <= 0 keeps exp stable with
    # a single cross-lane reduction.
    rmin = jnp.min(gram, axis=-1, keepdims=True)
    p = jnp.exp(rmin - gram)
    denom = jnp.sum(p, axis=-1, keepdims=True)
    attn = p * pl.reciprocal(denom, approx=True)          # EUP slot

    # Fold beta into the (C, C) attention and cast to bf16 once (hoisted out
    # of the chunk loop) -> epilogue is just `feat + x`.
    attn_b = (attn * beta_ref[0]).astype(jnp.bfloat16)

    # Chunked apply + residual: never materialise a full (C, HW) f32 feat_e;
    # reload the f32 x chunk from VMEM so its live range stays short.
    for start in range(0, hw, chunk):
        size = min(chunk, hw - start)
        xc = x_ref[:, start:start + size]                 # (C, size) f32
        feat = lax.dot_general(
            attn_b, xc.astype(jnp.bfloat16),
            dimension_numbers=(((1,), (0,)), ((), ())),
            preferred_element_type=jnp.float32)
        o_ref[:, start:start + size] = (feat + xc).astype(o_ref.dtype)


# --------------------------------------------------------------------------
# Tiled two-phase path (grid = (B, n_hw_tiles))
# --------------------------------------------------------------------------
def _gram_softmax_kernel(beta_ref, x_ref, attn_ref, acc_ref, *, hw, tile, ragged):
    t = pl.program_id(1)

    @pl.when(t == 0)
    def _():
        acc_ref[...] = jnp.zeros_like(acc_ref)

    xt = x_ref[...]                                       # (C, tile) f32
    if ragged:
        # Zero lanes past the logical end of x in the last tile so the Gram
        # accumulation stays exact (out-of-bounds block lanes are undefined).
        valid = hw - t * tile
        lane = lax.broadcasted_iota(jnp.int32, xt.shape, 1)
        xt = jnp.where(lane < valid, xt, 0.0)

    acc_ref[...] += lax.dot_general(
        xt, xt, dimension_numbers=(((1,), (1,)), ((), ())),
        preferred_element_type=jnp.float32)

    @pl.when(t == pl.num_programs(1) - 1)
    def _():
        gram = acc_ref[...]
        rmin = jnp.min(gram, axis=-1, keepdims=True)
        p = jnp.exp(rmin - gram)
        denom = jnp.sum(p, axis=-1, keepdims=True)
        attn = p * pl.reciprocal(denom, approx=True)
        attn_ref[...] = (attn * beta_ref[0]).astype(attn_ref.dtype)


def _apply_kernel(attn_ref, x_ref, o_ref):
    xc = x_ref[...]                                       # (C, tile) f32
    feat = lax.dot_general(
        attn_ref[...], xc.astype(jnp.bfloat16),
        dimension_numbers=(((1,), (0,)), ((), ())),
        preferred_element_type=jnp.float32)
    o_ref[...] = (feat + xc).astype(o_ref.dtype)          # beta already folded


# --------------------------------------------------------------------------
# Wrapper
# --------------------------------------------------------------------------
def channel_attention_module(x, beta, *, hw_tile=None, force_tiled=False):
    """Pallas implementation of _ChannelAttentionModule.forward.

    x:    (B, C, H, W) float32
    beta: (1,)         float32 (the learnable nn.Parameter, init = 0)
    """
    B, C, H, W = x.shape
    HW = H * W
    x_flat = x.reshape(B, C, HW)                 # no pad, no output slice
    beta = jnp.asarray(beta, jnp.float32).reshape((1,))

    budget, small_vmem_part = _tpu_vmem_info()

    # ---- fused-path sizing (per-batch slab, double-buffered in + out) ----
    Cs = _round_up(C, 8)
    HWp = _round_up(HW, 128)
    chunk = min(2048, max(512, ((8 << 20) // (10 * Cs)) // 128 * 128))
    chunk = max(128, min(chunk, HWp))
    slab = Cs * HWp * 4
    cc = Cs * _round_up(C, 128) * 4
    fused_est = 5 * slab + 10 * Cs * chunk + 4 * cc + (2 << 20)
    fused_fits = fused_est <= budget

    # ---- HW tile for the two-phase path ----
    if hw_tile is None:
        hw_tile = min(4096, max(512, ((4 << 20) // (4 * Cs)) // 128 * 128))
    hw_tile = max(128, min(_round_up(hw_tile, 128), HWp))
    n_tiles = pl.cdiv(HW, hw_tile)

    # On 2-TensorCore / 64-MiB-VMEM parts (v7x), grid=(B,) with B==1 idles a
    # core; the tiled apply call parallelises over HW tiles as well.
    two_core_hint = small_vmem_part and B == 1 and n_tiles >= 2

    use_tiled = force_tiled or (not fused_fits) or two_core_hint

    if not use_tiled:
        out_flat = pl.pallas_call(
            functools.partial(_fused_kernel, hw=HW, chunk=chunk),
            out_shape=jax.ShapeDtypeStruct((B, C, HW), x.dtype),
            grid_spec=pltpu.PrefetchScalarGridSpec(
                num_scalar_prefetch=0,
                grid=(B,),
                in_specs=[
                    pl.BlockSpec(memory_space=pltpu.MemorySpace.SMEM),  # beta
                    pl.BlockSpec((pl.Squeezed(), C, HW), lambda b: (b, 0, 0)),
                ],
                out_specs=pl.BlockSpec((pl.Squeezed(), C, HW),
                                       lambda b: (b, 0, 0)),
            ),
            compiler_params=pltpu.CompilerParams(
                dimension_semantics=("parallel",),
                vmem_limit_bytes=budget),
            cost_estimate=pl.CostEstimate(
                flops=4 * B * C * C * HW,
                transcendentals=B * C * C,
                bytes_accessed=2 * B * C * HW * 4),
        )(beta, x_flat)
        return out_flat.reshape(B, C, H, W)

    # ---- two-phase tiled path ----
    ragged = (HW % hw_tile) != 0

    # Phase 1: Gram accumulated over HW tiles, softmax + beta fold at the end.
    attn_b = pl.pallas_call(
        functools.partial(_gram_softmax_kernel, hw=HW, tile=hw_tile,
                          ragged=ragged),
        out_shape=jax.ShapeDtypeStruct((B, C, C), jnp.bfloat16),
        grid_spec=pltpu.PrefetchScalarGridSpec(
            num_scalar_prefetch=0,
            grid=(B, n_tiles),
            in_specs=[
                pl.BlockSpec(memory_space=pltpu.MemorySpace.SMEM),      # beta
                pl.BlockSpec((pl.Squeezed(), C, hw_tile),
                             lambda b, t: (b, 0, t)),
            ],
            out_specs=pl.BlockSpec((pl.Squeezed(), C, C),
                                   lambda b, t: (b, 0, 0)),
            scratch_shapes=[pltpu.VMEM((C, C), jnp.float32)],
        ),
        compiler_params=pltpu.CompilerParams(
            dimension_semantics=("parallel", "arbitrary"),
            vmem_limit_bytes=budget),
        cost_estimate=pl.CostEstimate(
            flops=2 * B * C * C * HW,
            transcendentals=B * C * C,
            bytes_accessed=B * C * HW * 4 + B * C * C * 2),
    )(beta, x_flat)

    # Phase 2: apply attention + residual per HW tile, both axes parallel.
    out_flat = pl.pallas_call(
        _apply_kernel,
        out_shape=jax.ShapeDtypeStruct((B, C, HW), x.dtype),
        grid_spec=pltpu.PrefetchScalarGridSpec(
            num_scalar_prefetch=0,
            grid=(B, n_tiles),
            in_specs=[
                pl.BlockSpec((pl.Squeezed(), C, C), lambda b, t: (b, 0, 0)),
                pl.BlockSpec((pl.Squeezed(), C, hw_tile),
                             lambda b, t: (b, 0, t)),
            ],
            out_specs=pl.BlockSpec((pl.Squeezed(), C, hw_tile),
                                   lambda b, t: (b, 0, t)),
        ),
        compiler_params=pltpu.CompilerParams(
            dimension_semantics=("parallel", "parallel"),
            vmem_limit_bytes=budget),
        cost_estimate=pl.CostEstimate(
            flops=2 * B * C * C * HW,
            transcendentals=0,
            bytes_accessed=2 * B * C * HW * 4 + B * C * C * 2),
    )(attn_b, x_flat)

    return out_flat.reshape(B, C, H, W)


# --------------------------------------------------------------------------
# Pure-JAX reference (mirrors the PyTorch module, f32 throughout)
# --------------------------------------------------------------------------
def _reference(x, beta):
    B, C, H, W = x.shape
    a = x.reshape(B, C, H * W)
    att = jnp.einsum("bci,bdi->bcd", a, a,
                     precision=jax.lax.Precision.HIGHEST)
    att_new = jnp.max(att, axis=-1, keepdims=True) - att
    att_sm = jax.nn.softmax(att_new, axis=-1)
    feat = jnp.einsum("bcd,bdi->bci", att_sm, a,
                      precision=jax.lax.Precision.HIGHEST)
    return beta.reshape(())[...] * feat.reshape(B, C, H, W) + x


if __name__ == "__main__":
    key = jax.random.PRNGKey(0)
    k1, k2 = jax.random.split(key)

    # Small NCHW feature maps consistent with the module.
    x1 = jax.random.normal(k1, (2, 4, 16, 16), dtype=jnp.float32)  # HW = 256
    x2 = jax.random.normal(k2, (2, 4, 9, 15), dtype=jnp.float32)   # HW = 135 (ragged)
    beta0 = jnp.zeros((1,), jnp.float32)        # nn.Parameter(torch.zeros(1))
    beta1 = jnp.full((1,), 0.5, jnp.float32)    # exercise the attention path

    cases = [
        ("fused/hw256", channel_attention_module(x1, beta1),
         _reference(x1, beta1), 3e-2),
        ("tiled/hw256", channel_attention_module(x1, beta1, force_tiled=True,
                                                 hw_tile=128),
         _reference(x1, beta1), 3e-2),
        ("fused/hw135", channel_attention_module(x2, beta1),
         _reference(x2, beta1), 3e-2),
        ("tiled/hw135", channel_attention_module(x2, beta1, force_tiled=True,
                                                 hw_tile=128),
         _reference(x2, beta1), 3e-2),
        ("beta0", channel_attention_module(x1, beta0), x1, 1e-6),
    ]
    for name, got, want, tol in cases:
        got = jax.block_until_ready(got)
        np.testing.assert_allclose(np.asarray(got), np.asarray(want),
                                   rtol=0.0, atol=tol, err_msg=name)

    print("KERNEL_OK")
</pallas_src>

<mosaic_0001>
module attributes {stable_mosaic.version = 11 : i64} {
  func.func @_fused_kernel(%arg0: i32, %arg1: memref<1xf32, #tpu.memory_space<smem>>, %arg2: memref<1x4x256xf32, #tpu.memory_space<vmem>>, %arg3: memref<1x4x256xf32, #tpu.memory_space<vmem>>) attributes {dimension_semantics = [#tpu.dimension_semantics<parallel>], iteration_bounds = array<i64: 2>, scalar_prefetch = 0 : i64, scratch_operands = 0 : i64, tpu.core_type = #tpu.core_type<tc>, window_params = [{transform_indices = @transform_0, window_bounds = array<i64: 1>}, {transform_indices = @transform_1, window_bounds = array<i64: 1, 4, 256>}, {transform_indices = @transform_2, window_bounds = array<i64: 1, 4, 256>}]} {
    %c0 = arith.constant 0 : index
    %c0_0 = arith.constant 0 : index
    %c0_1 = arith.constant 0 : index
    %0 = vector.load %arg2[%c0, %c0_0, %c0_1] : memref<1x4x256xf32, #tpu.memory_space<vmem>>, vector<1x4x256xf32>
    %1 = vector.shape_cast %0 : vector<1x4x256xf32> to vector<4x256xf32>
    %cst = arith.constant dense<0.000000e+00> : vector<4x4xf32>
    %2 = tpu.matmul %1, %1, %cst {dimension_numbers = #tpu.dot_dimension_numbers<[1], [1], [0], [0], [0, 0, 1, 0], [], []>} : vector<4x256xf32>, vector<4x256xf32>, vector<4x4xf32> -> vector<4x4xf32>
    %cst_2 = arith.constant dense<0x7F800000> : vector<4xf32>
    %3 = vector.multi_reduction <minimumf>, %2, %cst_2 [1] : vector<4x4xf32> to vector<4xf32>
    %4 = vector.shape_cast %3 : vector<4xf32> to vector<4x1xf32>
    %5 = vector.broadcast %4 : vector<4x1xf32> to vector<4x4xf32>
    %6 = arith.subf %5, %2 : vector<4x4xf32>
    %7 = math.exp %6 : vector<4x4xf32>
    %cst_3 = arith.constant dense<0.000000e+00> : vector<4xf32>
    %8 = vector.multi_reduction <add>, %7, %cst_3 [1] : vector<4x4xf32> to vector<4xf32>
    %9 = vector.shape_cast %8 : vector<4xf32> to vector<4x1xf32>
    %10 = tpu.reciprocal %9 {approx = true} : vector<4x1xf32> -> vector<4x1xf32>
    %11 = vector.broadcast %10 : vector<4x1xf32> to vector<4x4xf32>
    %12 = arith.mulf %7, %11 : vector<4x4xf32>
    %c0_4 = arith.constant 0 : index
    %13 = memref.load %arg1[%c0_4] : memref<1xf32, #tpu.memory_space<smem>>
    %14 = vector.broadcast %13 : f32 to vector<4x4xf32>
    %15 = arith.mulf %12, %14 : vector<4x4xf32>
    %16 = arith.truncf %15 : vector<4x4xf32> to vector<4x4xbf16>
    %c0_5 = arith.constant 0 : index
    %c0_6 = arith.constant 0 : index
    %c0_7 = arith.constant 0 : index
    %17 = vector.load %arg2[%c0_5, %c0_6, %c0_7] : memref<1x4x256xf32, #tpu.memory_space<vmem>>, vector<1x4x256xf32>
    %18 = vector.shape_cast %17 : vector<1x4x256xf32> to vector<4x256xf32>
    %19 = arith.truncf %18 : vector<4x256xf32> to vector<4x256xbf16>
    %cst_8 = arith.constant dense<0.000000e+00> : vector<4x256xf32>
    %20 = tpu.matmul %16, %19, %cst_8 {dimension_numbers = #tpu.dot_dimension_numbers<[1], [0], [0], [1], [0, 0, 1, 1], [], []>} : vector<4x4xbf16>, vector<4x256xbf16>, vector<4x256xf32> -> vector<4x256xf32>
    %21 = arith.addf %20, %18 : vector<4x256xf32>
    %c0_9 = arith.constant 0 : index
    %c0_10 = arith.constant 0 : index
    %c0_11 = arith.constant 0 : index
    %22 = vector.load %arg3[%c0_9, %c0_10, %c0_11] : memref<1x4x256xf32, #tpu.memory_space<vmem>>, vector<1x4x256xf32>
    %23 = vector.shape_cast %22 : vector<1x4x256xf32> to vector<4x256xf32>
    %24 = vector.shape_cast %21 : vector<4x256xf32> to vector<1x4x256xf32>
    tpu.vector_store %arg3[%c0_9, %c0_10, %c0_11], %24 {strides = array<i32>} : memref<1x4x256xf32, #tpu.memory_space<vmem>>, vector<1x4x256xf32>,
    return
  }
  func.func @transform_0(%arg0: i32) -> i32 {
    %c0_i32 = arith.constant 0 : i32
    %c0_i32_0 = arith.constant 0 : i32
    return %c0_i32 : i32
  }
  func.func @transform_1(%arg0: i32) -> (i32, i32, i32) {
    %c0_i32 = arith.constant 0 : i32
    %c0_i32_0 = arith.constant 0 : i32
    %c0_i32_1 = arith.constant 0 : i32
    return %arg0, %c0_i32, %c0_i32_0 : i32, i32, i32
  }
  func.func @transform_2(%arg0: i32) -> (i32, i32, i32) {
    %c0_i32 = arith.constant 0 : i32
    %c0_i32_0 = arith.constant 0 : i32
    %c0_i32_1 = arith.constant 0 : i32
    return %arg0, %c0_i32, %c0_i32_0 : i32, i32, i32
  }
}

</mosaic_0001>

<bundles_post_ra>
// kernel: tpu_custom_call.1
= control target key start
LH: loop header
LB: loop body
LE: loop exit
PB: predicated region body
PF: predicated region fallthrough
CT: control target
= control target key end

     0   :  { %s750_s0 = inlined_call_operand.<no memory space> [shape: f32[1], index: 0, kind: input, shape index: {}]   ;;  %s751_s1 = inlined_call_operand.hbm [shape: f32[2,4,256], index: 1, kind: input, shape index: {}]   ;;  %s752_s2 = inlined_call_operand.hbm [shape: f32[2,4,256], index: 2, kind: output, shape index: {}]  }
   0x1   :  { %7 = sst [smem:[#allocation2]] %s750_s0 }
   0x2   :  { %8 = vsyncpa [#allocation4], 0 }
   0x3   :  { %10 = vsyncpa [#allocation4 + $0x1], 0 }
   0x4   :  { %11 = vsyncpa [#allocation5], 0 }
   0x5   :  { %13 = vsyncpa [#allocation5 + $0x1], 0  ;;  %s585_s11 = smov 0   ;;  %s587_s12 = smov 0  }
   0x6   :  { %s589_s13 = smov 0   ;;  %s591_s14 = smov 0  }
   0x7 LB: > { %s606_s0 = sadd.s32 4294967295, %s562_s14   ;;  %s396_s15 = sadd.s32 4294967294, %s562_s14   ;;  %s562_s14 = sphi %s591_s14, %s767_s14   ;;  %s558_s13 = sphi %s589_s13, %s766_s13   ;;  %s554_s12 = sphi %s587_s12, %s765_s12   ;;  %s550_s11 = sphi %s585_s11, %s764_s11  }
   0x8   : > { %s610_s16 = sadd.s32 1, %s562_s14   ;;  %s47_s17 = sadd.s32 1, %s558_s13 }
   0x9   : > { %s44_s18 = ssub.s32 %s562_s14, %s610_s16  ;;  %p54_p0 = scmp.ne.s32.totalorder %s558_s13, %s554_s12 }
   0xa   : > { %p45_p1 = scmp.eq.s32.totalorder %s44_s18, 0  ;;  %p55_p2 = scmp.eq.s32.totalorder %s562_s14, 0 }
   0xb   : > { %p60_p3 = scmp.ne.s32.totalorder %s554_s12, %s550_s11  ;;  %p61_p4 = scmp.eq.s32.totalorder %s606_s0, 0 }
   0xc   : > { %s622_s19 = scalar_select %p45_p1, %s558_s13, %s47_s17  }
   0xd   : > { %p624_p5 = por %p55_p2, %p54_p0  ;;  %p628_p6 = por %p61_p4, %p60_p3 }
   0xe   : > { %p84_p7 = scmp.eq.s32.totalorder %s606_s0, 1  ;;  %p90_p8 = scmp.eq.s32.totalorder %s396_s15, 1 }
   0xf   : > { %p426_p10 = scmp.lt.s32.totalorder %s562_s14, 2  ;;  %s113_s24 = sand.u32 1, %s558_s13  }
  0x10   : > { %p635_p11 = por %p84_p7, %p54_p0  ;;  %p639_p12 = por %p90_p8, %p60_p3 }
  0x11   : > { %s412_s25 = sshll.u32 %s562_s14, 7  ;;  %s399_s26 = sshll.u32 %s113_s24, 3 }
  0x12   : > { %s756_s22 = scalar_select %p635_p11, 1, 0 }
  0x13   : > { %s757_s23 = scalar_select %p639_p12, 1, 0 }
  0x14   : > { %s648_s29 = scalar_lea.hbm %s751_s1, %s412_s25  ;;  %s117_s30 = scalar_lea.vmem [#allocation3], %s399_s26 }
  0x15   : > { %s125_s3 = sshll.u32 %s117_s30, 4  ;;  %p652_p13 = pnand %p426_p10, %p624_p5  ;;  %s656_s3 = int_to_ptr.vmem [resolvable:$true] %s125_s3 }
  0x16   : > { %s114_s5 = scalar_lea.sflag [#allocation4], %s113_s24  ;;  %s466_s6 = scalar_lea.hbm %s648_s29, 128 }
  0x17   : > { %p467_p2 = scmp.ne.s32.totalorder %s648_s29, %s466_s6  ;;  %p468_p3 = pneg %p652_p13 }
  0x18   : > { %s471_s9 = scalar_lea.hbm %s751_s1, 256  ;;  %p472_p5 = scmp.lt.u32.totalorder %s648_s29, %s751_s1 }
  0x19   : > { %p469_p4 = pnand %p468_p3, %p467_p2  ;;  %p473_p8 = scmp.lt.u32.totalorder %s471_s9, %s466_s6 }
  0x1a   : > { %p475_p9 = scmp.lt.u32.totalorder %s466_s6, %s648_s29 }
  0x1b   : > { %p470_p7 = pneg %p469_p4  ;;  %p474_p10 = por %p473_p8, %p472_p5 }
  0x1d   : > { %p476_p0 = por %p475_p9, %p474_p10 }
  0x1f   : > { %p477_p1 = pnand %p476_p0, %p470_p7 }
  0x21   : > { %480 = shalt.err (!%p477_p1)
}
  0x22   : > { %s481_s17 = scalar_lea.vmem %s656_s3, 128  ;;  %s564_s18 = smov [#allocation3]  }
  0x23   : > { %p482_p2 = scmp.ne.s32.totalorder %s656_s3, %s481_s17  ;;  %s486_s20 = sshll.u32 %s564_s18, 4  ;;  %s487_s20 = int_to_ptr.vmem [resolvable:$false] %s486_s20 }
  0x24   : > { %s488_s24 = scalar_lea.vmem %s487_s20, 256  ;;  %p489_p11 = scmp.lt.s32.totalorder %s656_s3, %s487_s20 }
  0x25   : > { %p484_p4 = pnand %p482_p2, %p468_p3  ;;  %p490_p5 = scmp.lt.s32.totalorder %s488_s24, %s481_s17 }
  0x27   : > { %p485_p12 = pneg %p484_p4  ;;  %p491_p8 = por %p490_p5, %p489_p11 }
  0x29   : > { %p492_p9 = pnand %p491_p8, %p485_p12 }
  0x2b   : > { %495 = shalt.err (!%p492_p9)
}
  0x2c   : > { %421 = dma.hbm_to_vmem [thread:$0]  (!%p652_p13), %s648_s29, 128, %s656_s3, %s114_s5  }
  0x2d   : > { %p759_p0 = scmp.lt.s32.totalorder %s562_s14, 3  ;;  %p760_p1 = scmp.ge.s32.totalorder %s562_s14, 1 }
  0x2f   : > { %p131_p3 = pnand %p760_p1, %p759_p0 }
  0x30   : > { %s690_s25 = sand.u32 (!%p131_p3), 1, %s554_s12  }
  0x31   : > { %134 = sbr.rel (%p131_p3) target bundleno = 825 (0x339), region = 28  ;;  %s403_s26 = sshll.u32 (!%p131_p3), %s690_s25, 3 }
  0x32   : > { %s137_s27 = scalar_lea.sflag (!%p131_p3), [#allocation4], %s690_s25  ;;  %s140_s28 = scalar_lea.vmem (!%p131_p3), [#allocation3], %s403_s26 }
  0x38   : > { %541 = dma.done.wait (%p628_p6), %s137_s27, 128  }
  0x39   : > { %543 = vsyncadd (%p628_p6), %s137_s27, 4294967168  ;;  %v162_v0 = vld [vmem:[%s140_s28] sm:$0xff]  ;;  %vm236_vm0 = vcmask 27648   ;;  %vm258_vm1 = vcmask 1041408   ;;  %v565_v12 = vmov 0   ;;  %s248_s21 = sld [smem:[#allocation2]] }
  0x3a   : > { %v164_v1 = vcombine.high %v162_v0, %v162_v0  ;;  %v252_v11 = vpack.c.bf16 %v162_v0, %v162_v0  ;;  %297 = vmatprep.mubr.bf16.mxu1 %v565_v12  ;;  %vm254_vm2 = vcmask 31744   ;;  %s413_s29 = sshll.u32 %s606_s0, 7  ;;  %s160_s30 = scalar_lea.vmem [#allocation6], %s403_s26 }
  0x3b   : > { %s326_s3 = sshll.u32 %s160_s30, 4  ;;  %s706_s6 = scalar_lea.hbm %s752_s2, %s413_s29  ;;  %s708_s3 = int_to_ptr.vmem [resolvable:$true] %s326_s3 }
  0x3c   : > { %166 = vmatprep.subr.mxu0 %v164_v1  ;;  %230 = vmatprep.mubr.f32.mxu0 %v164_v1  ;;  %v253_v10 = vpack.c.bf16 %v164_v1, %v164_v1  ;;  %v260_v13 = vsel %vm258_vm1, %v252_v11, 0  ;;  %s312_s7 = scalar_lea.sflag [#allocation5], %s690_s25  ;;  %s496_s0 = scalar_lea.vmem %s708_s3, 128 }
  0x3d   : > { %167 = vmatpush1.xpose.msra.mxu0 %v162_v0  ;;  %p497_p6 = scmp.ne.s32.totalorder %s708_s3, %s496_s0  ;;  %p761_p11 = scmp.ne.s32.totalorder %s756_s22, 0 }
  0x3e   : > { %405 = vmatprep.subr.msk.bf16.mxu1 %vm258_vm1, %v253_v10  ;;  %s566_s8 = smov [#allocation6]  }
  0x3f   : > { %266 = vmatpush1.bf16.msra.mxu1 %v260_v13  ;;  %v249_v16 = vstv %s248_s21  ;;  %p498_p12 = pnand %p497_p6, %p761_p11  ;;  %s500_s9 = sshll.u32 %s566_s8, 4  ;;  %s501_s9 = int_to_ptr.vmem [resolvable:$false] %s500_s9 }
  0x40   : > { %231 = vmatmul.mubr.f32.vlgmr.msra.gmra.mrb[0].mxu0 %v162_v0  ;;  %s502_s10 = scalar_lea.vmem %s501_s9, 256  ;;  %p503_p7 = scmp.lt.s32.totalorder %s708_s3, %s501_s9 }
  0x41   : > { %p499_p13 = pneg %p498_p12  ;;  %p504_p10 = scmp.lt.s32.totalorder %s502_s10, %s496_s0 }
  0x43   : > { %p505_p2 = por %p504_p10, %p503_p7 }
  0x45   : > { %p506_p4 = pnand %p505_p2, %p499_p13 }
 0x113   : > { %v232_v2 = vpop.f32.mrb[0].mxu0 }
 0x114   : > { %v234_v3 = vpop.f32.mrb[1].mxu0  ;;  %v237_v4 = vsel %vm236_vm0, %v232_v2, inf }
 0x115   : > { %238 = vmin.xlane.f32.xlu0 %v237_v4 }
 0x1a2   : > { %v239_v5 = vpop.xlane.xlu0 %238 }
 0x1a3   : > { %v240_v6 = vsub.f32 %v239_v5, %v232_v2 }
 0x1a5   : > { %v241_v7 = vmul.f32 1.442695, %v240_v6 }
 0x1a7   : > { %462 = vpow2.f32 %v241_v7 }
 0x1b1   : > { %v463_v8 = vpop.eup %462 }
 0x1b2   : > { %v243_v9 = vsel %vm236_vm0, %v463_v8, 0.0 }
 0x1b3   : > { %244 = vadd.xlane.f32.xlu0 %v243_v9 }
 0x240   : > { %v245_v14 = vpop.xlane.xlu0 %244 }
 0x241   : > { %464 = vrcp.f32 %v245_v14 }
 0x24b   : > { %v465_v15 = vpop.eup %464 }
 0x24c   : > { %v247_v17 = vmul.f32 %v465_v15, %v463_v8 }
 0x24e   : > { %v250_v18 = vmul.f32 %v249_v16, %v247_v17 }
 0x250   : > { %v251_v19 = vpack.c.bf16 %v250_v18, %v250_v18 }
 0x252   : > { %406 = vmatmul.mubr.msk.bf16.vlgmr.msra.gmra.mrb[0].mxu1 %vm254_vm2, %v251_v19 }
 0x325   : > { %v299_v20 = vpop.f32.mrb[0].mxu1 }
 0x326   : > { %v300_v21 = vadd.f32 %v299_v20, %v162_v0  ;;  %v301_v22 = vpop.f32.mrb[1].mxu1 }
 0x327   : > { %v302_v23 = vadd.f32 %v301_v22, %v164_v1  ;;  %v303_v24 = vpop.f32.mrb[2].mxu1 }
 0x328   : > { %v304_v25 = vpop.f32.mrb[3].mxu1 }
 0x329   : > { %v308_v26 = vcombine.low %v300_v21, %v302_v23 }
 0x32b   : > { %310 = vst [vmem:[%s160_s30] sm:$0xff] %v308_v26 }
 0x32c   : > { %509 = shalt.err (!%p506_p4)
}
 0x32d   : > { %s510_s15 = scalar_lea.hbm %s706_s6, 128  ;;  %s514_s20 = scalar_lea.hbm %s752_s2, 256 }
 0x32e   : > { %p511_p5 = scmp.ne.s32.totalorder %s706_s6, %s510_s15  ;;  %p515_p0 = scmp.lt.u32.totalorder %s706_s6, %s752_s2 }
 0x32f   : > { %p516_p1 = scmp.lt.u32.totalorder %s514_s20, %s510_s15  ;;  %p518_p6 = scmp.lt.u32.totalorder %s510_s15, %s706_s6 }
 0x330   : > { %p512_p8 = pnand %p511_p5, %p761_p11 }
 0x331   : > { %p517_p3 = por %p516_p1, %p515_p0 }
 0x332   : > { %p513_p9 = pneg %p512_p8 }
 0x333   : > { %p519_p12 = por %p518_p6, %p517_p3 }
 0x335   : > { %p520_p13 = pnand %p519_p12, %p513_p9 }
 0x337   : > { %523 = shalt.err (!%p520_p13)
}
 0x338   : > { %416 = dma.vmem_to_hbm [thread:$0]  (%p761_p11), %s708_s3, 128, %s706_s6, %s312_s7  }
 0x339 PF: > { %s338_s26 = sand.u32 1, %s550_s11   ;;  %p762_p7 = scmp.ne.s32.totalorder %s757_s23, 0 }
 0x33a   : > { %p763_p10 = scmp.ge.s32.totalorder %s562_s14, 2  ;;  %s339_s27 = scalar_lea.sflag [#allocation5], %s338_s26 }
 0x33c   : > { %p423_p2 = pnand %p763_p10, %p762_p7 }
 0x33e   : > { %545 = dma.done.wait (!%p423_p2), %s339_s27, 128  }
 0x33f   : > { %547 = vsyncadd (!%p423_p2), %s339_s27, 4294967168  ;;  %p16_p4 = scmp.ge.s32.totalorder %s610_s16, 4   ;;  %s764_s11 = smov %s554_s12 }
 0x340   : > { %s765_s12 = smov %s558_s13  ;;  %s766_s13 = smov %s622_s19 }
 0x341   : > { %s767_s14 = smov %s610_s16  ;;  %18 = sbr.rel (!%p16_p4) target bundleno = 7 (0x7), region = 73 }
 0x348   :  { %344 = vsyncpa [#allocation4], 1 }
 0x349   :  { %346 = vsyncpa [#allocation4 + $0x1], 1 }
 0x34a   :  { %347 = vsyncpa [#allocation5], 1 }
 0x34b   :  { %349 = vsyncpa [#allocation5 + $0x1], 1 }

</bundles_post_ra>
